<compile_context>
chip_gen: v6e
topology: v6e:2x2x1
jax: 0.10.0
libtpu: 0.0.40
codegen_flags: <defaults>
</compile_context>

<pallas_src>
import math

import jax
import jax.numpy as jnp
from jax import lax
from jax.experimental import pallas as pl
from jax.experimental.pallas import tpu as pltpu


# ---------------------------------------------------------------------------
# Shared GRU gate math (values in, value out; all f32 on the VPU/EUP)
# ---------------------------------------------------------------------------
def _gru_gates(gi, gh, h):
    """gi, gh: (B, 3H) pre-activations (bias already added). Gate order r|z|n."""
    H = h.shape[-1]
    r = jax.nn.sigmoid(gi[:, 0:H] + gh[:, 0:H])
    z = jax.nn.sigmoid(gi[:, H:2 * H] + gh[:, H:2 * H])
    n = jnp.tanh(gi[:, 2 * H:3 * H] + r * gh[:, 2 * H:3 * H])
    return (1.0 - z) * n + z * h


# ---------------------------------------------------------------------------
# Single-step kernel (matches Decoder.forward exactly)
# ---------------------------------------------------------------------------
def _decoder_step_kernel(y_ref, h_ref, w_i_ref, w_h_ref, b_ref,
                         w_out_ref, b_out_ref, out_ref, h_new_ref):
    h = h_ref[...]
    gi = jnp.dot(y_ref[...], w_i_ref[...],
                 preferred_element_type=jnp.float32) + b_ref[0:1, :]
    gh = jnp.dot(h, w_h_ref[...],
                 preferred_element_type=jnp.float32) + b_ref[1:2, :]
    h_new = _gru_gates(gi, gh, h)
    h_new_ref[...] = h_new
    # Linear(H, 1) as VPU multiply + lane reduction (no 1-lane MXU push).
    out_ref[...] = (jnp.sum(h_new * w_out_ref[...], axis=-1, keepdims=True)
                    + b_out_ref[0, 0])


def decoder_forward(y, prev_hidden, params):
    """One GRUCell + Linear step.  y: (B, F), prev_hidden: (B, H).

    NOTE: `prev_hidden` is donated (aliased into the rnn_hidden output); the
    caller must not read it after this call.
    """
    B, F = y.shape
    H = prev_hidden.shape[1]

    args = (y, prev_hidden,
            params["w_ih"], params["w_hh"], params["b"],
            params["w_out_row"], params["b_out"])

    vmem = pl.BlockSpec(memory_space=pltpu.MemorySpace.VMEM)
    smem = pl.BlockSpec(memory_space=pltpu.MemorySpace.SMEM)

    flops = 2 * B * (F * 3 * H + H * 3 * H + H) + 10 * B * H
    bytes_accessed = (sum(int(a.size) * a.dtype.itemsize for a in args)
                      + B * (H + 1) * 4)

    out, h_new = pl.pallas_call(
        _decoder_step_kernel,
        out_shape=(
            jax.ShapeDtypeStruct((B, 1), jnp.float32),
            jax.ShapeDtypeStruct((B, H), jnp.float32),
        ),
        in_specs=[vmem] * (len(args) - 1) + [smem],
        out_specs=(vmem, vmem),
        # prev_hidden (arg 1) aliases the rnn_hidden output (out 1).
        input_output_aliases={1: 1},
        cost_estimate=pl.CostEstimate(
            flops=flops, transcendentals=3 * B * H,
            bytes_accessed=bytes_accessed),
    )(*args)
    return out, h_new


# ---------------------------------------------------------------------------
# Fused T-step kernel: ONE grid invocation, in-kernel fori_loop recurrence.
# Semantically identical to T sequential Decoder.forward calls on ys[t];
# returns per-step outputs and the final hidden state.
# ---------------------------------------------------------------------------
def _decoder_seq_kernel(ys_ref, h0_ref, w_i_ref, w_h_ref, b_ref,
                        w_out_ref, b_out_ref, out_ref, h_last_ref, hs_scratch):
    T, B, F = ys_ref.shape
    H = h0_ref.shape[-1]

    # Phase 1 (hoisted): one big input-side MXU push for all T steps,
    # (T*B, F) x (F, 3H), with the ih bias folded in.
    gi_all = jnp.einsum("tbf,fg->tbg", ys_ref[...], w_i_ref[...],
                        preferred_element_type=jnp.float32) + b_ref[0:1, :]

    b_hh = b_ref[1:2, :]

    # Phase 2: serial recurrence — a single (B,H)x(H,3H) MXU push per step.
    def step(t, h):
        gh = jnp.dot(h, w_h_ref[...],
                     preferred_element_type=jnp.float32) + b_hh
        h_new = _gru_gates(gi_all[t], gh, h)
        hs_scratch[t] = h_new
        return h_new

    h_last = lax.fori_loop(0, T, step, h0_ref[...], unroll=True)
    h_last_ref[...] = h_last

    # Phase 3: Linear(H,1) head for all steps at once (VPU mul + lane
    # reduction), one dense (T, B) store instead of T masked (1,B,1) stores.
    hs = hs_scratch[...]                                   # (T, B, H)
    out_ref[...] = (jnp.sum(hs * w_out_ref[...], axis=-1)
                    + b_out_ref[0, 0])                     # (T, B)


def decoder_forward_seq(ys, h0, params):
    """Run T decoder steps in one pallas_call.  ys: (T, B, F), h0: (B, H)."""
    T, B, F = ys.shape
    H = h0.shape[1]

    args = (ys, h0,
            params["w_ih"], params["w_hh"], params["b"],
            params["w_out_row"], params["b_out"])

    vmem = pl.BlockSpec(memory_space=pltpu.MemorySpace.VMEM)
    smem = pl.BlockSpec(memory_space=pltpu.MemorySpace.SMEM)

    flops = (2 * T * B * F * 3 * H          # hoisted input matmul
             + 2 * T * B * H * 3 * H        # per-step hidden matmul
             + 12 * T * B * H)              # gates + head
    bytes_accessed = (sum(int(a.size) * a.dtype.itemsize for a in args)
                      + (T * B + B * H) * 4)

    outs, h_last = pl.pallas_call(
        _decoder_seq_kernel,
        out_shape=(
            jax.ShapeDtypeStruct((T, B), jnp.float32),     # per-step outputs
            jax.ShapeDtypeStruct((B, H), jnp.float32),     # final hidden
        ),
        in_specs=[vmem] * (len(args) - 1) + [smem],
        out_specs=(vmem, vmem),
        scratch_shapes=[pltpu.VMEM((T, B, H), jnp.float32)],
        cost_estimate=pl.CostEstimate(
            flops=flops, transcendentals=3 * T * B * H,
            bytes_accessed=bytes_accessed),
    )(*args)
    return outs[..., None], h_last           # (T, B, 1), (B, H)


# ---------------------------------------------------------------------------
# Parameters (mirrors nn.GRUCell / nn.Linear, pre-packed for the kernel)
# ---------------------------------------------------------------------------
def init_params(key, input_feature_len, hidden_size):
    F, H = input_feature_len, hidden_size
    k = 1.0 / math.sqrt(H)
    keys = jax.random.split(key, 6)

    # PyTorch layouts: weight_ih (3H, F), weight_hh (3H, H), biases (3H,)
    # with gate row order [r; z; n]; out.weight (1, H), out.bias (1,).
    w_ih = jax.random.uniform(keys[0], (3 * H, F), jnp.float32, -k, k)
    w_hh = jax.random.uniform(keys[1], (3 * H, H), jnp.float32, -k, k)
    b_ih = jax.random.uniform(keys[2], (3 * H,), jnp.float32, -k, k)
    b_hh = jax.random.uniform(keys[3], (3 * H,), jnp.float32, -k, k)
    w_out = jax.random.uniform(keys[4], (1, H), jnp.float32, -k, k)
    b_out = jax.random.uniform(keys[5], (1,), jnp.float32, -k, k)

    return {
        "w_ih": jnp.asarray(w_ih.T),                 # (F, 3H), gate cols [r|z|n]
        "w_hh": jnp.asarray(w_hh.T),                 # (H, 3H)
        "b": jnp.stack([b_ih, b_hh]),                # (2, 3H): [bias_ih; bias_hh]
        "w_out_row": jnp.asarray(w_out),             # (1, H)
        "b_out": jnp.asarray(b_out[None, :]),        # (1, 1)  (SMEM scalar)
    }


# ---------------------------------------------------------------------------
# Plain-JAX references for validation
# ---------------------------------------------------------------------------
def _reference_step(y, h, p):
    H = h.shape[-1]
    gi = y @ p["w_ih"] + p["b"][0:1]
    gh = h @ p["w_hh"] + p["b"][1:2]
    r = jax.nn.sigmoid(gi[:, 0:H] + gh[:, 0:H])
    z = jax.nn.sigmoid(gi[:, H:2 * H] + gh[:, H:2 * H])
    n = jnp.tanh(gi[:, 2 * H:3 * H] + r * gh[:, 2 * H:3 * H])
    h_new = (1.0 - z) * n + z * h
    out = jnp.sum(h_new * p["w_out_row"], axis=-1, keepdims=True) + p["b_out"]
    return out, h_new


def _reference_seq(ys, h0, p):
    outs = []
    h = h0
    for t in range(ys.shape[0]):
        o, h = _reference_step(ys[t], h, p)
        outs.append(o)
    return jnp.stack(outs), h


if __name__ == "__main__":
    B = 8     # batch
    F = 16    # input_feature_len
    H = 32    # hidden_size
    T = 6     # fused decode steps for the sequence kernel

    key = jax.random.PRNGKey(0)
    k_y, k_h, k_h0, k_seq, k_p = jax.random.split(key, 5)

    y = jax.random.normal(k_y, (B, F), jnp.float32)
    prev_hidden = jax.random.normal(k_h, (B, H), jnp.float32)
    h0 = jax.random.normal(k_h0, (B, H), jnp.float32)
    ys = jax.random.normal(k_seq, (T, B, F), jnp.float32)
    params = init_params(k_p, F, H)

    # References first (prev_hidden is donated by the single-step call).
    ref_out, ref_h = _reference_step(y, prev_hidden, params)
    ref_outs_seq, ref_h_seq = _reference_seq(ys, h0, params)

    # --- single-step kernel (exact Decoder.forward) ---
    out, rnn_hidden = decoder_forward(y, prev_hidden, params)
    out, rnn_hidden = jax.block_until_ready((out, rnn_hidden))
    assert out.shape == (B, 1) and rnn_hidden.shape == (B, H)
    assert jnp.allclose(out, ref_out, atol=1e-4, rtol=1e-4)
    assert jnp.allclose(rnn_hidden, ref_h, atol=1e-4, rtol=1e-4)

    # --- fused T-step kernel (T sequential Decoder.forward calls) ---
    outs_seq, h_last = decoder_forward_seq(ys, h0, params)
    outs_seq, h_last = jax.block_until_ready((outs_seq, h_last))
    assert outs_seq.shape == (T, B, 1) and h_last.shape == (B, H)
    assert jnp.allclose(outs_seq, ref_outs_seq, atol=1e-4, rtol=1e-4)
    assert jnp.allclose(h_last, ref_h_seq, atol=1e-4, rtol=1e-4)

    print("KERNEL_OK")
</pallas_src>

<mosaic_0001>
module attributes {stable_mosaic.version = 11 : i64} {
  func.func @_decoder_step_kernel(%arg0: memref<8x16xf32, #tpu.memory_space<vmem>>, %arg1: memref<8x32xf32, #tpu.memory_space<vmem>>, %arg2: memref<16x96xf32, #tpu.memory_space<vmem>>, %arg3: memref<32x96xf32, #tpu.memory_space<vmem>>, %arg4: memref<2x96xf32, #tpu.memory_space<vmem>>, %arg5: memref<1x32xf32, #tpu.memory_space<vmem>>, %arg6: memref<1x1xf32, #tpu.memory_space<smem>>, %arg7: memref<8x1xf32, #tpu.memory_space<vmem>>, %arg8: memref<8x32xf32, #tpu.memory_space<vmem>>) attributes {dimension_semantics = [], scalar_prefetch = 0 : i64, scratch_operands = 0 : i64, tpu.core_type = #tpu.core_type<tc>} {
    %c0 = arith.constant 0 : index
    %c0_0 = arith.constant 0 : index
    %0 = vector.load %arg1[%c0, %c0_0] : memref<8x32xf32, #tpu.memory_space<vmem>>, vector<8x32xf32>
    %c0_1 = arith.constant 0 : index
    %c0_2 = arith.constant 0 : index
    %1 = vector.load %arg0[%c0_1, %c0_2] : memref<8x16xf32, #tpu.memory_space<vmem>>, vector<8x16xf32>
    %c0_3 = arith.constant 0 : index
    %c0_4 = arith.constant 0 : index
    %2 = vector.load %arg2[%c0_3, %c0_4] : memref<16x96xf32, #tpu.memory_space<vmem>>, vector<16x96xf32>
    %cst = arith.constant dense<0.000000e+00> : vector<8x96xf32>
    %3 = tpu.matmul %1, %2, %cst {dimension_numbers = #tpu.dot_dimension_numbers<[1], [0], [0], [1], [0, 0, 1, 1], [], []>} : vector<8x16xf32>, vector<16x96xf32>, vector<8x96xf32> -> vector<8x96xf32>
    %c0_5 = arith.constant 0 : index
    %c0_6 = arith.constant 0 : index
    %4 = vector.load %arg4[%c0_5, %c0_6] : memref<2x96xf32, #tpu.memory_space<vmem>>, vector<1x96xf32>
    %5 = vector.broadcast %4 : vector<1x96xf32> to vector<8x96xf32>
    %6 = arith.addf %3, %5 : vector<8x96xf32>
    %c0_7 = arith.constant 0 : index
    %c0_8 = arith.constant 0 : index
    %7 = vector.load %arg3[%c0_7, %c0_8] : memref<32x96xf32, #tpu.memory_space<vmem>>, vector<32x96xf32>
    %cst_9 = arith.constant dense<0.000000e+00> : vector<8x96xf32>
    %8 = tpu.matmul %0, %7, %cst_9 {dimension_numbers = #tpu.dot_dimension_numbers<[1], [0], [0], [1], [0, 0, 1, 1], [], []>} : vector<8x32xf32>, vector<32x96xf32>, vector<8x96xf32> -> vector<8x96xf32>
    %c1 = arith.constant 1 : index
    %c0_10 = arith.constant 0 : index
    %9 = vector.load %arg4[%c1, %c0_10] : memref<2x96xf32, #tpu.memory_space<vmem>>, vector<1x96xf32>
    %10 = vector.broadcast %9 : vector<1x96xf32> to vector<8x96xf32>
    %11 = arith.addf %8, %10 : vector<8x96xf32>
    %12 = vector.extract_strided_slice %6 {offsets = [0, 0], sizes = [8, 32], strides = [1, 1]} : vector<8x96xf32> to vector<8x32xf32>
    %13 = vector.extract_strided_slice %11 {offsets = [0, 0], sizes = [8, 32], strides = [1, 1]} : vector<8x96xf32> to vector<8x32xf32>
    %14 = arith.addf %12, %13 : vector<8x32xf32>
    %15 = arith.negf %14 : vector<8x32xf32>
    %16 = math.exp %15 : vector<8x32xf32>
    %cst_11 = arith.constant 1.000000e+00 : f32
    %17 = vector.broadcast %cst_11 : f32 to vector<8x32xf32>
    %18 = arith.addf %17, %16 : vector<8x32xf32>
    %19 = arith.divf %17, %18 : vector<8x32xf32>
    %20 = vector.extract_strided_slice %6 {offsets = [0, 32], sizes = [8, 32], strides = [1, 1]} : vector<8x96xf32> to vector<8x32xf32>
    %21 = vector.extract_strided_slice %11 {offsets = [0, 32], sizes = [8, 32], strides = [1, 1]} : vector<8x96xf32> to vector<8x32xf32>
    %22 = arith.addf %20, %21 : vector<8x32xf32>
    %23 = arith.negf %22 : vector<8x32xf32>
    %24 = math.exp %23 : vector<8x32xf32>
    %cst_12 = arith.constant 1.000000e+00 : f32
    %25 = vector.broadcast %cst_12 : f32 to vector<8x32xf32>
    %26 = arith.addf %25, %24 : vector<8x32xf32>
    %27 = arith.divf %25, %26 : vector<8x32xf32>
    %28 = vector.extract_strided_slice %6 {offsets = [0, 64], sizes = [8, 32], strides = [1, 1]} : vector<8x96xf32> to vector<8x32xf32>
    %29 = vector.extract_strided_slice %11 {offsets = [0, 64], sizes = [8, 32], strides = [1, 1]} : vector<8x96xf32> to vector<8x32xf32>
    %30 = arith.mulf %19, %29 : vector<8x32xf32>
    %31 = arith.addf %28, %30 : vector<8x32xf32>
    %32 = math.tanh %31 : vector<8x32xf32>
    %cst_13 = arith.constant 1.000000e+00 : f32
    %33 = vector.broadcast %cst_13 : f32 to vector<8x32xf32>
    %34 = arith.subf %33, %27 : vector<8x32xf32>
    %35 = arith.mulf %34, %32 : vector<8x32xf32>
    %36 = arith.mulf %27, %0 : vector<8x32xf32>
    %37 = arith.addf %35, %36 : vector<8x32xf32>
    %c0_14 = arith.constant 0 : index
    %c0_15 = arith.constant 0 : index
    %38 = vector.load %arg8[%c0_14, %c0_15] : memref<8x32xf32, #tpu.memory_space<vmem>>, vector<8x32xf32>
    tpu.vector_store %arg8[%c0_14, %c0_15], %37 {strides = array<i32>} : memref<8x32xf32, #tpu.memory_space<vmem>>, vector<8x32xf32>,
    %c0_16 = arith.constant 0 : index
    %c0_17 = arith.constant 0 : index
    %39 = vector.load %arg5[%c0_16, %c0_17] : memref<1x32xf32, #tpu.memory_space<vmem>>, vector<1x32xf32>
    %40 = vector.broadcast %39 : vector<1x32xf32> to vector<8x32xf32>
    %41 = arith.mulf %37, %40 : vector<8x32xf32>
    %cst_18 = arith.constant dense<0.000000e+00> : vector<8xf32>
    %42 = vector.multi_reduction <add>, %41, %cst_18 [1] : vector<8x32xf32> to vector<8xf32>
    %43 = vector.shape_cast %42 : vector<8xf32> to vector<8x1xf32>
    %c0_19 = arith.constant 0 : index
    %c0_20 = arith.constant 0 : index
    %44 = memref.load %arg6[%c0_19, %c0_20] : memref<1x1xf32, #tpu.memory_space<smem>>
    %45 = vector.broadcast %44 : f32 to vector<8x1xf32>
    %46 = arith.addf %43, %45 : vector<8x1xf32>
    %c0_21 = arith.constant 0 : index
    %c0_22 = arith.constant 0 : index
    %47 = vector.load %arg7[%c0_21, %c0_22] : memref<8x1xf32, #tpu.memory_space<vmem>>, vector<8x1xf32>
    tpu.vector_store %arg7[%c0_21, %c0_22], %46 {strides = array<i32>} : memref<8x1xf32, #tpu.memory_space<vmem>>, vector<8x1xf32>,
    return
  }
}

</mosaic_0001>

<bundles_post_ra>
// kernel: tpu_custom_call.1
= control target key start
LH: loop header
LB: loop body
LE: loop exit
PB: predicated region body
PF: predicated region fallthrough
CT: control target
= control target key end

     0   :  { %15 = vsyncpa [#allocation4], 0  ;;  %s498_s0 = inlined_call_operand.hbm [shape: f32[8,16], index: 0, kind: input, shape index: {}]   ;;  %s499_s1 = inlined_call_operand.vmem [shape: f32[8,32], index: 1, kind: input, shape index: {}, may-alias: {1,8}]   ;;  %s500_s2 = inlined_call_operand.vmem [shape: f32[16,96], index: 2, kind: input, shape index: {}]   ;;  %s501_s3 = inlined_call_operand.hbm [shape: f32[32,96], index: 3, kind: input, shape index: {}]   ;;  %s502_s4 = inlined_call_operand.hbm [shape: f32[2,96], index: 4, kind: input, shape index: {}]   ;;  %s503_s5 = inlined_call_operand.vmem [shape: f32[1,32], index: 5, kind: input, shape index: {}]   ;;  %s504_s6 = inlined_call_operand.<no memory space> [shape: f32[1,1], index: 6, kind: input, shape index: {}]   ;;  %s505_s7 = inlined_call_operand.vmem [shape: f32[8,1], index: 7, kind: output, shape index: {0}]   ;;  %s506_s8 = inlined_call_operand.vmem [shape: f32[8,32], index: 8, kind: output, shape index: {1}, may-alias: {1,8}]  }
   0x1   :  { %16 = vsyncpa [#allocation6], 0  ;;  %s410_s27 = smov [#allocation5]  }
   0x2   :  { %s36_s28 = sshll.u32 %s410_s27, 4  ;;  %s37_s28 = int_to_ptr.vmem [resolvable:$true] %s36_s28 }
   0x3   :  { %s354_s29 = scalar_lea.vmem %s37_s28, 512  ;;  %p359_p1 = scmp.lt.s32.totalorder %s37_s28, %s37_s28 }
   0x4   :  { %p355_p0 = scmp.ne.s32.totalorder %s37_s28, %s354_s29  ;;  %p360_p2 = scmp.lt.s32.totalorder %s354_s29, %s354_s29 }
   0x6   :  { %p361_p3 = por %p360_p2, %p359_p1 }
   0x8   :  { %p362_p4 = pnand %p361_p3, %p355_p0 }
   0xa   :  { %365 = shalt.err (!%p362_p4)
}
   0xb   :  { %s411_s30 = smov 128   ;;  %s412_s9 = smov 8  }
   0xc   :  { %42 = dma.hbm_to_vmem [thread:$0]  %s501_s3, 512, %s37_s28, [#allocation6], %s411_s30, %s411_s30, %s412_s9  }
   0xd   :  { %s413_s12 = smov [#allocation3]   ;;  %s414_s14 = smov [#allocation7]  }
   0xe   :  { %s23_s13 = sshll.u32 %s413_s12, 4  ;;  %s49_s15 = sshll.u32 %s414_s14, 4  ;;  %s24_s13 = int_to_ptr.vmem [resolvable:$true] %s23_s13  ;;  %s50_s15 = int_to_ptr.vmem [resolvable:$true] %s49_s15 }
   0xf   :  { %s374_s16 = scalar_lea.vmem %s24_s13, 128  ;;  %p379_p6 = scmp.lt.s32.totalorder %s24_s13, %s24_s13 }
  0x10   :  { %p375_p5 = scmp.ne.s32.totalorder %s24_s13, %s374_s16  ;;  %p380_p7 = scmp.lt.s32.totalorder %s374_s16, %s374_s16 }
  0x12   :  { %p381_p8 = por %p380_p7, %p379_p6 }
  0x14   :  { %p382_p9 = pnand %p381_p8, %p375_p5 }
  0x16   :  { %385 = shalt.err (!%p382_p9)
}
  0x17   :  { %26 = dma.hbm_to_vmem [thread:$0]  %s498_s0, 128, %s24_s13, [#allocation4]  }
  0x18   :  { %s394_s19 = scalar_lea.vmem %s50_s15, 32  ;;  %p399_p11 = scmp.lt.s32.totalorder %s50_s15, %s50_s15 }
  0x19   :  { %p395_p10 = scmp.ne.s32.totalorder %s50_s15, %s394_s19  ;;  %p400_p12 = scmp.lt.s32.totalorder %s394_s19, %s394_s19 }
  0x1b   :  { %p401_p13 = por %p400_p12, %p399_p11 }
  0x1d   :  { %p402_p0 = pnand %p401_p13, %p395_p10 }
  0x1f   :  { %405 = shalt.err (!%p402_p0)
}
  0x20   :  { %52 = dma.hbm_to_vmem [thread:$0]  %s502_s4, 32, %s50_s15, [#allocation6]  }
  0x21   :  { %406 = dma.done.wait [#allocation4], 128  }
  0x22   :  { %407 = vsyncadd [#allocation4], 4294967168 }
  0x23   :  { %408 = dma.done.wait [#allocation6], 544  }
  0x24   :  { %409 = vsyncadd [#allocation6], 4294966752  ;;  %v415_v0 = vmov 0.0   ;;  %vm416_vm0 = vmmov 0   ;;  %v152_v1 = vld [vmem:[#allocation5 + $0x18] sm:$0xff]  ;;  %v151_v2 = vld [vmem:[#allocation5 + $0x10] sm:$0xff]  ;;  %v284_v39 = vstv %s504_s6 }
  0x25   :  { %319 = vmatprep.subr.mxu1 %v415_v0  ;;  %312 = vmatprep.subr.mxu0 %v415_v0  ;;  %v69_v3 = vld [vmem:[%s500_s2 + $0x8] sm:$0xff]  ;;  %v68_v4 = vld [vmem:[%s500_s2] sm:$0xff]  ;;  %vm75_vm1 = vcmask 130048   ;;  %v150_v5 = vld [vmem:[#allocation5 + $0x8] sm:$0xff]  ;;  %vm158_vm2 = vcmask 261120   ;;  %s417_s2 = smov 64  }
  0x26   :  { %316 = vmatprep.mubr.msk.f32.mxu0 %vm416_vm0, %v415_v0  ;;  %327 = vmatprep.mubr.msk.f32.mxu1 %vm416_vm0, %v415_v0  ;;  %v67_v6 = vld [vmem:[#allocation3] sm:$0xff]  ;;  %v149_v7 = vld [vmem:[#allocation5] sm:$0xff]  ;;  %s418_s26 = smov 32   ;;  %s419_s27 = smov 96   ;;  %vm286_vm3 = vcmask 7168  }
  0x27   :  { %320 = vmatpush3.msra.mxu1 %v152_v1  ;;  %313 = vmatpush3.msra.mxu0 %v69_v3  ;;  %v66_v8 = vld [vmem:[%s499_s1] sm:$0xff]  ;;  %v300_v10 = vld [vmem:[#allocation7 + $0x1] ss:$0 sm:$0xff]  ;;  %v298_v15 = vld [vmem:[#allocation7] ss:$0 sm:$0xff] }
  0x28   :  { %321 = vmatprep.subr.mxu1 %v415_v0  ;;  %314 = vmatprep.subr.mxu0 %v415_v0  ;;  %v303_v24 = vld [vmem:[%s503_s5] ss:$0 sm:$0xff] }
  0x29   :  { %322 = vmatpush3.msra.mxu1 %v151_v2  ;;  %315 = vmatpush3.msra.mxu0 %v68_v4 }
  0x2a   :  { %323 = vmatprep.subr.mxu1 %v415_v0  ;;  %317 = vmatmul.mubr.msk.f32.vlgmr.msra.gmra.mxu0 %vm75_vm1, %v67_v6 }
  0x2b   :  { %324 = vmatpush3.msra.mxu1 %v150_v5 }
  0x2c   :  { %325 = vmatprep.subr.mxu1 %v415_v0 }
  0x2d   :  { %326 = vmatpush3.msra.mxu1 %v149_v7 }
  0x2e   :  { %328 = vmatmul.mubr.msk.f32.vlgmr.msra.gmra.mxu1 %vm158_vm2, %v66_v8 }
  0xea   :  { %v145_v9 = vpop.f32.mrf.mxu0 }
  0xeb   :  { %v146_v16 = vadd.f32 %v298_v15, %v145_v9 }
  0xec   :  { %v318_v11 = vpop.f32.mrf.mxu0 }
  0xee   :  { %v228_v12 = vpop.f32.mrf.mxu1 }
  0xef   :  { %v229_v13 = vadd.f32 %v300_v10, %v228_v12 }
  0xf0   :  { %v329_v14 = vpop.f32.mrf.mxu1 }
  0xf1   :  { %240 = vrot.lane.b32.xlu0 %v229_v13, %s417_s2  ;;  %v232_v17 = vadd.f32 %v229_v13, %v146_v16 }
  0xf3   :  { %v302_v18 = vmul.f32 -1.442695, %v232_v17 }
  0xf5   :  { %340 = vpow2.f32 %v302_v18 }
 0x102   :  { %v341_v19 = vpop.eup %340 }
 0x103   :  { %v236_v20 = vadd.f32 1.0, %v341_v19 }
 0x105   :  { %342 = vrcp.f32 %v236_v20 }
 0x112   :  { %v343_v21 = vpop.eup %342 }
 0x113   :  { %v250_v29 = vsub.f32 1.0, %v343_v21 }
 0x163   :  { %v241_v22 = vpop.permute.xlu0 %240 }
 0x164   :  { %v243_v23 = vmul.f32 %v343_v21, %v241_v22 }
 0x166   :  { %245 = vrot.lane.b32.xlu0 %v243_v23, %s417_s2 }
 0x16a   :  { %272 = vrot.lane.b32.xlu0 %v303_v24, %s418_s26 }
 0x1d8   :  { %v246_v25 = vpop.permute.xlu0 %245 }
 0x1d9   :  { %v248_v26 = vadd.f32 %v246_v25, %v146_v16 }
 0x1db   :  { %344 = vtanh.f32 %v248_v26 }
 0x1dc   :  { %v273_v33 = vpop.permute.xlu0 %272 }
 0x1e8   :  { %v345_v27 = vpop.eup %344 }
 0x1e9   :  { %252 = vrot.lane.b32.xlu1 %v345_v27, %s419_s27 }
 0x1ed   :  { %256 = vrot.lane.b32.xlu1 %v66_v8, %s418_s26 }
 0x25b   :  { %v253_v28 = vpop.permute.xlu1 %252 }
 0x25c   :  { %v255_v31 = vmul.f32 %v253_v28, %v250_v29 }
 0x25f   :  { %v257_v30 = vpop.permute.xlu1 %256 }
 0x260   :  { %v259_v32 = vmul.f32 %v343_v21, %v257_v30 }
 0x262   :  { %v260_v34 = vadd.f32 %v259_v32, %v255_v31 }
 0x264   :  { %v275_v35 = vmul.f32 %v273_v33, %v260_v34 }
 0x266   :  { %277 = vrot.lane.b32.xlu1 %v275_v35, %s419_s27 }
 0x26a   :  { %262 = vrot.lane.b32.xlu1 %v260_v34, %s419_s27 }
 0x2d8   :  { %v278_v36 = vpop.permute.xlu1 %277 }
 0x2d9   :  { %v280_v37 = vsel %vm158_vm2, %v278_v36, 0.0 }
 0x2da   :  { %281 = vadd.xlane.f32.xlu0 %v280_v37 }
 0x2dc   :  { %v263_v38 = vpop.permute.xlu1 %262 }
 0x2dd   :  { %265 = vst.msk [vmem:[%s506_s8] sm:$0xff] %vm158_vm2, %v263_v38 }
 0x363   :  { %v282_v40 = vpop.xlane.xlu0 %281 }
 0x364   :  { %v285_v41 = vadd.f32 %v284_v39, %v282_v40 }
 0x366   :  { %287 = vst.msk [vmem:[%s505_s7] sm:$0xff] %vm286_vm3, %v285_v41 }
 0x367   :  { %296 = vsyncpa [#allocation4], 1 }
 0x368   :  { %297 = vsyncpa [#allocation6], 1 }

</bundles_post_ra>
